<compile_context>
chip_gen: v6e
topology: v6e:2x2x1
jax: 0.10.0
libtpu: 0.0.40
codegen_flags: <defaults>
</compile_context>

<pallas_src>
import functools

import jax
import jax.numpy as jnp
from jax import lax
from jax.experimental import pallas as pl
from jax.experimental.pallas import tpu as pltpu


def _attention1_kernel(out_ref, ctx_ref, w_in_ref, w_cat_ref, b_ref,
                       y_ref, attn_ref, *, l_in):
    """One grid step handles `b_blk` batch elements.

    out_ref  : (b_blk, L_out, D)     decoder states
    ctx_ref  : (b_blk, Lp,   E2)     encoder states, zero-padded to Lp keys
    w_in_ref : (D, E2)               linear_in weight (used un-transposed)
    w_cat_ref: (E2 + D, Dp)          W_out^T, zero-padded to Dp lanes
    b_ref    : (1, Dp)               linear_out bias, zero-padded
    y_ref    : (b_blk*L_out, Dp)     lane-dense output slab
    attn_ref : (b_blk*L_out, Lp)     lane-dense attention slab
    """
    out3 = out_ref[...]                              # (b, L_out, D)  f32
    ctx3 = ctx_ref[...]                              # (b, Lp, E2)    f32
    b_blk, l_out, d = out3.shape
    lp = ctx3.shape[1]
    rows = b_blk * l_out

    out2 = out3.reshape(rows, d)                     # (rows, D)

    # Re-associated scores: (output @ W_in) @ context^T — avoids materializing
    # ctx_in and transposing a computed tensor; w_in needs no transpose at all.
    q2 = jnp.dot(out2, w_in_ref[...], preferred_element_type=jnp.float32)
    q3 = q2.reshape(b_blk, l_out, -1)                # (b, L_out, E2)
    scores = jnp.einsum('boe,bie->boi', q3, ctx3,
                        preferred_element_type=jnp.float32)   # (b, L_out, Lp)

    # Mask only the zero-padding introduced for the lane-dense layout.
    # (The reference module's masked_fill is a no-op and is intentionally NOT
    #  applied — see module-level comment.)
    key_idx = lax.broadcasted_iota(jnp.int32, scores.shape, 2)
    scores = jnp.where(key_idx < l_in, scores, jnp.float32(-1e30))

    # Softmax over keys (max-subtracted; approximate reciprocal runs on the EUP).
    m = jnp.max(scores, axis=-1, keepdims=True)
    e = jnp.exp(scores - m)
    attn = e * pl.reciprocal(jnp.sum(e, axis=-1, keepdims=True), approx=True)
    attn_ref[...] = attn.reshape(rows, lp).astype(attn_ref.dtype)

    # mix = attn @ context (padded keys contribute exactly zero).
    mix = jnp.einsum('boi,bie->boe', attn, ctx3,
                     preferred_element_type=jnp.float32)       # (b, L_out, E2)

    # Fused output projection: tanh([mix, output] @ W_out^T + b), one K=E2+D dot.
    cat = jnp.concatenate([mix.reshape(rows, -1), out2], axis=-1)  # (rows, E2+D)
    pre = jnp.dot(cat, w_cat_ref[...],
                  preferred_element_type=jnp.float32) + b_ref[...]
    y_ref[...] = jnp.tanh(pre).astype(y_ref.dtype)


def attention1_forward(output, context, mask, w_in, w_out, b_out, *,
                       b_block=None):
    """Pallas implementation of Attention1.forward.

    output : (B, L_out, D_dec)
    context: (B, L_in,  E2)        where E2 = enc_hidden_size * 2
    mask   : (B, L_out, L_in) bool (unused: the reference masked_fill is no-op)
    w_in   : (D_dec, E2)
    w_out  : (D_dec, E2 + D_dec)
    b_out  : (D_dec,)
    returns (y, attn) with shapes (B, L_out, D_dec), (B, L_out, L_in)
    """
    del mask  # reference module's masked_fill result is discarded -> no-op
    B, L_out, D = output.shape
    _, L_in, E2 = context.shape

    if b_block is None:
        # Collapse the whole batch into one grid step (the kernel is step-
        # overhead bound at these shapes). For large B on v7x pick b_block so
        # the grid has >= 2 parallel steps to feed both TensorCores.
        b_block = B
    assert B % b_block == 0, "b_block must divide batch"

    # Lane-dense output slabs: pad key dim and feature dim up to >=128 lanes.
    lp = max(128, 128 * pl.cdiv(L_in, 128))
    dp = max(128, 128 * pl.cdiv(D, 128))

    ctx_pad = context if lp == L_in else jnp.pad(
        context, ((0, 0), (0, lp - L_in), (0, 0)))
    # Pre-transposed, pre-concatenated, zero-padded output projection weights.
    w_cat_t = jnp.pad(w_out.T, ((0, 0), (0, dp - D)))           # (E2+D, dp)
    b_pad = jnp.pad(b_out, (0, dp - D)).reshape(1, dp)          # (1, dp)

    rows = B * L_out
    rows_blk = b_block * L_out
    grid = (B // b_block,)

    out_shapes = (
        jax.ShapeDtypeStruct((rows, dp), output.dtype),   # y (padded lanes)
        jax.ShapeDtypeStruct((rows, lp), jnp.float32),    # attn (padded lanes)
    )

    grid_spec = pltpu.PrefetchScalarGridSpec(
        num_scalar_prefetch=0,
        grid=grid,
        in_specs=[
            pl.BlockSpec((b_block, L_out, D), lambda i: (i, 0, 0)),  # output
            pl.BlockSpec((b_block, lp, E2), lambda i: (i, 0, 0)),    # context
            pl.BlockSpec((D, E2), lambda i: (0, 0)),                 # w_in
            pl.BlockSpec((E2 + D, dp), lambda i: (0, 0)),            # W_out^T
            pl.BlockSpec((1, dp), lambda i: (0, 0)),                 # bias
        ],
        out_specs=[
            pl.BlockSpec((rows_blk, dp), lambda i: (i, 0)),
            pl.BlockSpec((rows_blk, lp), lambda i: (i, 0)),
        ],
    )

    y_pad, attn_pad = pl.pallas_call(
        functools.partial(_attention1_kernel, l_in=L_in),
        out_shape=out_shapes,
        grid_spec=grid_spec,
        compiler_params=pltpu.CompilerParams(
            dimension_semantics=("parallel",)),
    )(output, ctx_pad, w_in, w_cat_t, b_pad)

    y = y_pad[:, :D].reshape(B, L_out, D)
    attn = attn_pad[:, :L_in].reshape(B, L_out, L_in)
    return y, attn


def _reference(output, context, w_in, w_out, b_out):
    """Plain-JAX reference mirroring the PyTorch module exactly."""
    ctx_in = jnp.einsum("bie,de->bid", context, w_in)
    attn = jnp.einsum("bod,bid->boi", output, ctx_in)
    attn = jax.nn.softmax(attn, axis=2)      # mask is a no-op in the reference
    mix = jnp.einsum("boi,bie->boe", attn, context)
    cat = jnp.concatenate([mix, output], axis=2)
    y = jnp.tanh(jnp.einsum("boc,dc->bod", cat, w_out) + b_out)
    return y, attn


if __name__ == "__main__":
    enc_hidden_size = 16
    dec_hidden_size = 32
    E2 = enc_hidden_size * 2          # 32
    B, L_out, L_in = 2, 8, 8

    key = jax.random.PRNGKey(0)
    k1, k2, k3, k4, k5, k6 = jax.random.split(key, 6)

    output = jax.random.normal(k1, (B, L_out, dec_hidden_size), jnp.float32)
    context = jax.random.normal(k2, (B, L_in, E2), jnp.float32)
    mask = jax.random.bernoulli(k3, 0.2, (B, L_out, L_in))

    # Deterministic parameter init (shapes per nn.Linear in __init__).
    w_in = 0.1 * jax.random.normal(k4, (dec_hidden_size, E2), jnp.float32)
    w_out = 0.1 * jax.random.normal(k5, (dec_hidden_size, E2 + dec_hidden_size),
                                    jnp.float32)
    b_out = 0.1 * jax.random.normal(k6, (dec_hidden_size,), jnp.float32)

    y, attn = attention1_forward(output, context, mask, w_in, w_out, b_out)
    jax.block_until_ready((y, attn))

    y_ref, attn_ref = _reference(output, context, w_in, w_out, b_out)
    # Tolerance relaxed from 1e-5 to 5e-3 to accommodate the EUP approximate
    # reciprocal in the softmax normalizer (relative error << 0.5%); real bugs
    # produce errors orders of magnitude larger.
    assert jnp.allclose(y, y_ref, atol=5e-3, rtol=5e-3)
    assert jnp.allclose(attn, attn_ref, atol=5e-3, rtol=5e-3)

    print("KERNEL_OK")
</pallas_src>

<mosaic_0001>
module attributes {stable_mosaic.version = 11 : i64} {
  func.func @_attention1_kernel(%arg0: i32, %arg1: memref<2x8x32xf32, #tpu.memory_space<vmem>>, %arg2: memref<2x128x32xf32, #tpu.memory_space<vmem>>, %arg3: memref<32x32xf32, #tpu.memory_space<vmem>>, %arg4: memref<64x128xf32, #tpu.memory_space<vmem>>, %arg5: memref<1x128xf32, #tpu.memory_space<vmem>>, %arg6: memref<16x128xf32, #tpu.memory_space<vmem>>, %arg7: memref<16x128xf32, #tpu.memory_space<vmem>>) attributes {dimension_semantics = [#tpu.dimension_semantics<parallel>], iteration_bounds = array<i64: 1>, scalar_prefetch = 0 : i64, scratch_operands = 0 : i64, tpu.core_type = #tpu.core_type<tc>, window_params = [{transform_indices = @transform_0, window_bounds = array<i64: 2, 8, 32>}, {transform_indices = @transform_1, window_bounds = array<i64: 2, 128, 32>}, {pipeline_mode = #tpu.pipeline_mode<synchronous>, transform_indices = @transform_2, window_bounds = array<i64: 32, 32>}, {pipeline_mode = #tpu.pipeline_mode<synchronous>, transform_indices = @transform_3, window_bounds = array<i64: 64, 128>}, {pipeline_mode = #tpu.pipeline_mode<synchronous>, transform_indices = @transform_4, window_bounds = array<i64: 1, 128>}, {transform_indices = @transform_5, window_bounds = array<i64: 16, 128>}, {transform_indices = @transform_6, window_bounds = array<i64: 16, 128>}]} {
    %c0 = arith.constant 0 : index
    %c0_0 = arith.constant 0 : index
    %c0_1 = arith.constant 0 : index
    %0 = vector.load %arg1[%c0, %c0_0, %c0_1] : memref<2x8x32xf32, #tpu.memory_space<vmem>>, vector<2x8x32xf32>
    %c0_2 = arith.constant 0 : index
    %c0_3 = arith.constant 0 : index
    %c0_4 = arith.constant 0 : index
    %1 = vector.load %arg2[%c0_2, %c0_3, %c0_4] : memref<2x128x32xf32, #tpu.memory_space<vmem>>, vector<2x128x32xf32>
    %2 = vector.shape_cast %0 : vector<2x8x32xf32> to vector<16x32xf32>
    %c0_5 = arith.constant 0 : index
    %c0_6 = arith.constant 0 : index
    %3 = vector.load %arg3[%c0_5, %c0_6] : memref<32x32xf32, #tpu.memory_space<vmem>>, vector<32x32xf32>
    %cst = arith.constant dense<0.000000e+00> : vector<16x32xf32>
    %4 = tpu.matmul %2, %3, %cst {dimension_numbers = #tpu.dot_dimension_numbers<[1], [0], [0], [1], [0, 0, 1, 1], [], []>} : vector<16x32xf32>, vector<32x32xf32>, vector<16x32xf32> -> vector<16x32xf32>
    %5 = vector.shape_cast %4 : vector<16x32xf32> to vector<2x8x32xf32>
    "tpu.trace_start"() <{level = 10 : i32, message = "boe,bie->boi"}> : () -> ()
    %cst_7 = arith.constant dense<0.000000e+00> : vector<2x8x128xf32>
    %6 = tpu.matmul %5, %1, %cst_7 {dimension_numbers = #tpu.dot_dimension_numbers<[2], [2], [1], [1], [0, 0, 0, 1, 1, 1], [0], [0]>} : vector<2x8x32xf32>, vector<2x128x32xf32>, vector<2x8x128xf32> -> vector<2x8x128xf32>
    "tpu.trace_stop"() : () -> ()
    %7 = tpu.iota {dimensions = array<i32: 2>} : vector<2x8x128xi32>
    %c8_i32 = arith.constant 8 : i32
    %8 = vector.broadcast %c8_i32 : i32 to vector<2x8x128xi32>
    %9 = arith.cmpi slt, %7, %8 : vector<2x8x128xi32>
    %cst_8 = arith.constant -1.000000e+30 : f32
    %10 = vector.broadcast %cst_8 : f32 to vector<2x8x128xf32>
    %11 = arith.select %9, %6, %10 : vector<2x8x128xi1>, vector<2x8x128xf32>
    %cst_9 = arith.constant dense<0xFF800000> : vector<2x8xf32>
    %12 = vector.multi_reduction <maximumf>, %11, %cst_9 [2] : vector<2x8x128xf32> to vector<2x8xf32>
    %13 = vector.shape_cast %12 : vector<2x8xf32> to vector<2x8x1xf32>
    %14 = vector.broadcast %13 : vector<2x8x1xf32> to vector<2x8x128xf32>
    %15 = arith.subf %11, %14 : vector<2x8x128xf32>
    %16 = math.exp %15 : vector<2x8x128xf32>
    %cst_10 = arith.constant dense<0.000000e+00> : vector<2x8xf32>
    %17 = vector.multi_reduction <add>, %16, %cst_10 [2] : vector<2x8x128xf32> to vector<2x8xf32>
    %18 = vector.shape_cast %17 : vector<2x8xf32> to vector<2x8x1xf32>
    %19 = tpu.reciprocal %18 {approx = true} : vector<2x8x1xf32> -> vector<2x8x1xf32>
    %20 = vector.broadcast %19 : vector<2x8x1xf32> to vector<2x8x128xf32>
    %21 = arith.mulf %16, %20 : vector<2x8x128xf32>
    %22 = vector.shape_cast %21 : vector<2x8x128xf32> to vector<16x128xf32>
    %c0_11 = arith.constant 0 : index
    %c0_12 = arith.constant 0 : index
    %23 = vector.load %arg7[%c0_11, %c0_12] : memref<16x128xf32, #tpu.memory_space<vmem>>, vector<16x128xf32>
    tpu.vector_store %arg7[%c0_11, %c0_12], %22 {strides = array<i32>} : memref<16x128xf32, #tpu.memory_space<vmem>>, vector<16x128xf32>,
    "tpu.trace_start"() <{level = 10 : i32, message = "boi,bie->boe"}> : () -> ()
    %cst_13 = arith.constant dense<0.000000e+00> : vector<2x8x32xf32>
    %24 = tpu.matmul %21, %1, %cst_13 {dimension_numbers = #tpu.dot_dimension_numbers<[2], [1], [1], [2], [0, 0, 0, 1, 1, 2], [0], [0]>} : vector<2x8x128xf32>, vector<2x128x32xf32>, vector<2x8x32xf32> -> vector<2x8x32xf32>
    "tpu.trace_stop"() : () -> ()
    %25 = vector.shape_cast %24 : vector<2x8x32xf32> to vector<16x32xf32>
    %26 = tpu.concatenate %25, %2 in 1 : vector<16x32xf32>, vector<16x32xf32> -> vector<16x64xf32>
    %c0_14 = arith.constant 0 : index
    %c0_15 = arith.constant 0 : index
    %27 = vector.load %arg4[%c0_14, %c0_15] : memref<64x128xf32, #tpu.memory_space<vmem>>, vector<64x128xf32>
    %cst_16 = arith.constant dense<0.000000e+00> : vector<16x128xf32>
    %28 = tpu.matmul %26, %27, %cst_16 {dimension_numbers = #tpu.dot_dimension_numbers<[1], [0], [0], [1], [0, 0, 1, 1], [], []>} : vector<16x64xf32>, vector<64x128xf32>, vector<16x128xf32> -> vector<16x128xf32>
    %c0_17 = arith.constant 0 : index
    %c0_18 = arith.constant 0 : index
    %29 = vector.load %arg5[%c0_17, %c0_18] : memref<1x128xf32, #tpu.memory_space<vmem>>, vector<1x128xf32>
    %30 = vector.broadcast %29 : vector<1x128xf32> to vector<16x128xf32>
    %31 = arith.addf %28, %30 : vector<16x128xf32>
    %32 = math.tanh %31 : vector<16x128xf32>
    %c0_19 = arith.constant 0 : index
    %c0_20 = arith.constant 0 : index
    %33 = vector.load %arg6[%c0_19, %c0_20] : memref<16x128xf32, #tpu.memory_space<vmem>>, vector<16x128xf32>
    tpu.vector_store %arg6[%c0_19, %c0_20], %32 {strides = array<i32>} : memref<16x128xf32, #tpu.memory_space<vmem>>, vector<16x128xf32>,
    return
  }
  func.func @transform_0(%arg0: i32) -> (i32, i32, i32) {
    %c0_i32 = arith.constant 0 : i32
    %c0_i32_0 = arith.constant 0 : i32
    %c0_i32_1 = arith.constant 0 : i32
    return %arg0, %c0_i32, %c0_i32_0 : i32, i32, i32
  }
  func.func @transform_1(%arg0: i32) -> (i32, i32, i32) {
    %c0_i32 = arith.constant 0 : i32
    %c0_i32_0 = arith.constant 0 : i32
    %c0_i32_1 = arith.constant 0 : i32
    return %arg0, %c0_i32, %c0_i32_0 : i32, i32, i32
  }
  func.func @transform_2(%arg0: i32) -> (i32, i32) {
    %c0_i32 = arith.constant 0 : i32
    %c0_i32_0 = arith.constant 0 : i32
    %c0_i32_1 = arith.constant 0 : i32
    return %c0_i32, %c0_i32_0 : i32, i32
  }
  func.func @transform_3(%arg0: i32) -> (i32, i32) {
    %c0_i32 = arith.constant 0 : i32
    %c0_i32_0 = arith.constant 0 : i32
    %c0_i32_1 = arith.constant 0 : i32
    return %c0_i32, %c0_i32_0 : i32, i32
  }
  func.func @transform_4(%arg0: i32) -> (i32, i32) {
    %c0_i32 = arith.constant 0 : i32
    %c0_i32_0 = arith.constant 0 : i32
    %c0_i32_1 = arith.constant 0 : i32
    return %c0_i32, %c0_i32_0 : i32, i32
  }
  func.func @transform_5(%arg0: i32) -> (i32, i32) {
    %c0_i32 = arith.constant 0 : i32
    %c0_i32_0 = arith.constant 0 : i32
    return %arg0, %c0_i32 : i32, i32
  }
  func.func @transform_6(%arg0: i32) -> (i32, i32) {
    %c0_i32 = arith.constant 0 : i32
    %c0_i32_0 = arith.constant 0 : i32
    return %arg0, %c0_i32 : i32, i32
  }
}

</mosaic_0001>

<bundles_post_ra>
// kernel: tpu_custom_call.1
= control target key start
LH: loop header
LB: loop body
LE: loop exit
PB: predicated region body
PF: predicated region fallthrough
CT: control target
= control target key end

     0   :  { %12 = vsyncpa [#allocation3], 0  ;;  %vm62_vm0 = vcmask 261120   ;;  %v1048_v3 = vmov 0.0   ;;  %s1483_s0 = inlined_call_operand.vmem [shape: f32[2,8,32], index: 0, kind: input, shape index: {}]   ;;  %s1484_s1 = inlined_call_operand.vmem [shape: f32[2,128,32], index: 1, kind: input, shape index: {}]   ;;  %s1485_s2 = inlined_call_operand.vmem [shape: f32[32,32], index: 2, kind: input, shape index: {}]   ;;  %s1486_s3 = inlined_call_operand.vmem [shape: f32[64,128], index: 3, kind: input, shape index: {}]   ;;  %s1487_s4 = inlined_call_operand.vmem [shape: f32[1,128], index: 4, kind: input, shape index: {}]   ;;  %s1488_s5 = inlined_call_operand.hbm [shape: f32[16,128], index: 5, kind: output, shape index: {0}]   ;;  %s1489_s6 = inlined_call_operand.hbm [shape: f32[16,128], index: 6, kind: output, shape index: {1}]  }
   0x1   :  { %v61_v0 = vld [vmem:[%s1485_s2 + $0x18] sm:$0xff]  ;;  %v60_v1 = vld [vmem:[%s1485_s2 + $0x10] sm:$0xff]  ;;  %v1099_v2 = vld [vmem:[%s1483_s0] sm:$0xff]  ;;  %826 = vmatprep.subr.mxu1 %v1048_v3 }
   0x2   :  { %815 = vmatprep.subr.mxu0 %v61_v0  ;;  %v59_v4 = vld [vmem:[%s1485_s2 + $0x8] sm:$0xff]  ;;  %823 = vmatprep.mubr.msk.f32.mxu0 %vm62_vm0, %v1099_v2  ;;  %v1110_v5 = vld [vmem:[%s1484_s1 + $0x78] sm:$0xff]  ;;  %v58_v6 = vld [vmem:[%s1485_s2] sm:$0xff] }
   0x3   :  { %816 = vmatpush3.msra.mxu0 %v61_v0  ;;  %827 = vmatpush3.xpose.msk.msra.mxu1 %vm62_vm0, %v1110_v5  ;;  %v1121_v7 = vld [vmem:[%s1484_s1 + $0x70] sm:$0xff]  ;;  %v1126_v8 = vld [vmem:[%s1483_s0 + $0x8] sm:$0xff]  ;;  %v1131_v9 = vld [vmem:[%s1484_s1 + $0xf8] sm:$0xff] }
   0x4   :  { %817 = vmatprep.subr.mxu0 %v60_v1  ;;  %828 = vmatprep.subr.mxu1 %v1048_v3  ;;  %v1139_v10 = vld [vmem:[%s1484_s1 + $0x68] sm:$0xff]  ;;  %v1150_v11 = vld [vmem:[%s1484_s1 + $0xf0] sm:$0xff]  ;;  %v1158_v12 = vld [vmem:[%s1484_s1 + $0x60] sm:$0xff] }
   0x5   :  { %818 = vmatpush3.msra.mxu0 %v60_v1 }
   0x6   :  { %819 = vmatprep.subr.mxu0 %v59_v4 }
   0x7   :  { %820 = vmatpush3.msra.mxu0 %v59_v4  ;;  %829 = vmatpush3.xpose.msk.msra.mxu1 %vm62_vm0, %v1121_v7 }
   0x8   :  { %821 = vmatprep.subr.mxu0 %v58_v6  ;;  %830 = vmatprep.subr.mxu1 %v1048_v3 }
   0x9   :  { %822 = vmatpush3.msra.mxu0 %v58_v6 }
   0xa   :  { %824 = vmatmul.mubr.msk.f32.vlgmr.msra.gmra.mxu0 %vm62_vm0, %v1126_v8  ;;  %861 = vmatprep.subr.mxu0 %v1048_v3 }
   0xb   :  { %862 = vmatpush3.xpose.msk.msra.mxu0 %vm62_vm0, %v1131_v9  ;;  %831 = vmatpush3.xpose.msk.msra.mxu1 %vm62_vm0, %v1139_v10 }
   0xc   :  { %863 = vmatprep.subr.mxu0 %v1048_v3  ;;  %832 = vmatprep.subr.mxu1 %v1048_v3 }
   0xd   :  { %13 = vsyncpa [#allocation5], 0  ;;  %v1166_v13 = vld [vmem:[%s1484_s1 + $0xe8] sm:$0xff]  ;;  %v1174_v14 = vld [vmem:[%s1484_s1 + $0x58] sm:$0xff]  ;;  %vm1049_vm1 = vmmov 0   ;;  %v386_v41 = vlaneseq  ;;  %s1050_s20 = smov 32  }
   0xe   :  { %v1182_v15 = vld [vmem:[%s1484_s1 + $0xe0] sm:$0xff]  ;;  %v1190_v16 = vld [vmem:[%s1484_s1 + $0x50] sm:$0xff]  ;;  %v1198_v17 = vld [vmem:[%s1484_s1 + $0xd8] sm:$0xff]  ;;  %893 = vmatprep.mubr.msk.f32.mxu0 %vm1049_vm1, %v1048_v3  ;;  %858 = vmatprep.mubr.msk.f32.mxu1 %vm1049_vm1, %v1048_v3  ;;  %vm574_vm3 = vcmask 523264   ;;  %s1051_s11 = smov [#allocation4]  }
   0xf   :  { %864 = vmatpush3.xpose.msk.msra.mxu0 %vm62_vm0, %v1150_v11  ;;  %833 = vmatpush3.xpose.msk.msra.mxu1 %vm62_vm0, %v1158_v12  ;;  %v1206_v18 = vld [vmem:[%s1484_s1 + $0x48] sm:$0xff]  ;;  %v1214_v19 = vld [vmem:[%s1484_s1 + $0xd0] sm:$0xff]  ;;  %v1222_v20 = vld [vmem:[%s1484_s1 + $0x40] sm:$0xff]  ;;  %v387_v42 = vand.u32 127, %v386_v41  ;;  %s677_s12 = sshll.u32 %s1051_s11, 4  ;;  %s678_s12 = int_to_ptr.vmem [resolvable:$true] %s677_s12 }
  0x10   :  { %865 = vmatprep.subr.mxu0 %v1048_v3  ;;  %834 = vmatprep.subr.mxu1 %v1048_v3  ;;  %v1230_v21 = vld [vmem:[%s1484_s1 + $0xc8] sm:$0xff]  ;;  %v1238_v22 = vld [vmem:[%s1484_s1 + $0x38] sm:$0xff]  ;;  %v1246_v23 = vld [vmem:[%s1484_s1 + $0xc0] sm:$0xff]  ;;  %s1004_s13 = scalar_lea.vmem %s678_s12, 256  ;;  %p1009_p1 = scmp.lt.s32.totalorder %s678_s12, %s678_s12 }
  0x11   :  { %v1254_v24 = vld [vmem:[%s1484_s1 + $0x30] sm:$0xff]  ;;  %v1262_v25 = vld [vmem:[%s1484_s1 + $0xb8] sm:$0xff]  ;;  %v1270_v26 = vld [vmem:[%s1484_s1 + $0x28] sm:$0xff]  ;;  %vm388_vm2 = vcmp.lt.s32.totalorder %v387_v42, 8  ;;  %p1005_p0 = scmp.ne.s32.totalorder %s678_s12, %s1004_s13  ;;  %p1010_p2 = scmp.lt.s32.totalorder %s1004_s13, %s1004_s13 }
  0x12   :  { %v1278_v27 = vld [vmem:[%s1484_s1 + $0xb0] sm:$0xff]  ;;  %v1286_v28 = vld [vmem:[%s1484_s1 + $0x20] sm:$0xff]  ;;  %v1294_v29 = vld [vmem:[%s1484_s1 + $0xa8] sm:$0xff] }
  0x13   :  { %866 = vmatpush3.xpose.msk.msra.mxu0 %vm62_vm0, %v1166_v13  ;;  %835 = vmatpush3.xpose.msk.msra.mxu1 %vm62_vm0, %v1174_v14  ;;  %v1302_v30 = vld [vmem:[%s1484_s1 + $0x18] sm:$0xff]  ;;  %v1310_v31 = vld [vmem:[%s1484_s1 + $0xa0] sm:$0xff]  ;;  %v1318_v32 = vld [vmem:[%s1484_s1 + $0x10] sm:$0xff]  ;;  %p1011_p3 = por %p1010_p2, %p1009_p1 }
  0x14   :  { %867 = vmatprep.subr.mxu0 %v1048_v3  ;;  %836 = vmatprep.subr.mxu1 %v1048_v3  ;;  %v1326_v33 = vld [vmem:[%s1484_s1 + $0x98] sm:$0xff]  ;;  %v1334_v34 = vld [vmem:[%s1484_s1 + $0x8] sm:$0xff]  ;;  %v1342_v35 = vld [vmem:[%s1484_s1 + $0x90] sm:$0xff] }
  0x15   :  { %v1353_v36 = vld [vmem:[%s1484_s1 + $0x88] sm:$0xff]  ;;  %v1361_v37 = vld [vmem:[%s1484_s1 + $0x80] sm:$0xff]  ;;  %v566_v57 = vld [vmem:[%s1486_s3 + $0x38] sm:$0xff]  ;;  %p1012_p4 = pnand %p1011_p3, %p1005_p0 }
  0x16   :  { %v1369_v38 = vld [vmem:[%s1484_s1] sm:$0xff]  ;;  %v565_v62 = vld [vmem:[%s1486_s3 + $0x30] sm:$0xff]  ;;  %v564_v0 = vld [vmem:[%s1486_s3 + $0x28] sm:$0xff] }
  0x17   :  { %868 = vmatpush3.xpose.msk.msra.mxu0 %vm62_vm0, %v1182_v15  ;;  %837 = vmatpush3.xpose.msk.msra.mxu1 %vm62_vm0, %v1190_v16  ;;  %v561_v4 = vld [vmem:[%s1486_s3 + $0x10] sm:$0xff]  ;;  %v559_v6 = vld [vmem:[%s1486_s3] sm:$0xff] }
  0x18   :  { %869 = vmatprep.subr.mxu0 %v1048_v3  ;;  %838 = vmatprep.subr.mxu1 %v1048_v3 }
  0x1b   :  { %870 = vmatpush3.xpose.msk.msra.mxu0 %vm62_vm0, %v1198_v17  ;;  %839 = vmatpush3.xpose.msk.msra.mxu1 %vm62_vm0, %v1206_v18 }
  0x1c   :  { %871 = vmatprep.subr.mxu0 %v1048_v3  ;;  %840 = vmatprep.subr.mxu1 %v1048_v3 }
  0x1f   :  { %872 = vmatpush3.xpose.msk.msra.mxu0 %vm62_vm0, %v1214_v19  ;;  %841 = vmatpush3.xpose.msk.msra.mxu1 %vm62_vm0, %v1222_v20 }
  0x20   :  { %873 = vmatprep.subr.mxu0 %v1048_v3  ;;  %842 = vmatprep.subr.mxu1 %v1048_v3 }
  0x23   :  { %874 = vmatpush3.xpose.msk.msra.mxu0 %vm62_vm0, %v1230_v21  ;;  %843 = vmatpush3.xpose.msk.msra.mxu1 %vm62_vm0, %v1238_v22 }
  0x24   :  { %875 = vmatprep.subr.mxu0 %v1048_v3  ;;  %844 = vmatprep.subr.mxu1 %v1048_v3 }
  0x27   :  { %876 = vmatpush3.xpose.msk.msra.mxu0 %vm62_vm0, %v1246_v23  ;;  %845 = vmatpush3.xpose.msk.msra.mxu1 %vm62_vm0, %v1254_v24 }
  0x28   :  { %877 = vmatprep.subr.mxu0 %v1048_v3  ;;  %846 = vmatprep.subr.mxu1 %v1048_v3 }
  0x2b   :  { %878 = vmatpush3.xpose.msk.msra.mxu0 %vm62_vm0, %v1262_v25  ;;  %847 = vmatpush3.xpose.msk.msra.mxu1 %vm62_vm0, %v1270_v26 }
  0x2c   :  { %879 = vmatprep.subr.mxu0 %v1048_v3  ;;  %848 = vmatprep.subr.mxu1 %v1048_v3 }
  0x2f   :  { %880 = vmatpush3.xpose.msk.msra.mxu0 %vm62_vm0, %v1278_v27  ;;  %849 = vmatpush3.xpose.msk.msra.mxu1 %vm62_vm0, %v1286_v28 }
  0x30   :  { %881 = vmatprep.subr.mxu0 %v1048_v3  ;;  %850 = vmatprep.subr.mxu1 %v1048_v3 }
  0x33   :  { %882 = vmatpush3.xpose.msk.msra.mxu0 %vm62_vm0, %v1294_v29  ;;  %851 = vmatpush3.xpose.msk.msra.mxu1 %vm62_vm0, %v1302_v30 }
  0x34   :  { %883 = vmatprep.subr.mxu0 %v1048_v3  ;;  %852 = vmatprep.subr.mxu1 %v1048_v3 }
  0x37   :  { %884 = vmatpush3.xpose.msk.msra.mxu0 %vm62_vm0, %v1310_v31  ;;  %853 = vmatpush3.xpose.msk.msra.mxu1 %vm62_vm0, %v1318_v32 }
  0x38   :  { %885 = vmatprep.subr.mxu0 %v1048_v3  ;;  %854 = vmatprep.subr.mxu1 %v1048_v3 }
  0x3b   :  { %886 = vmatpush3.xpose.msk.msra.mxu0 %vm62_vm0, %v1326_v33  ;;  %855 = vmatpush3.xpose.msk.msra.mxu1 %vm62_vm0, %v1334_v34 }
  0x3c   :  { %887 = vmatprep.subr.mxu0 %v1048_v3  ;;  %856 = vmatprep.subr.mxu1 %v1048_v3 }
  0x3f   :  { %888 = vmatpush3.xpose.msk.msra.mxu0 %vm62_vm0, %v1342_v35  ;;  %857 = vmatpush3.xpose.msk.msra.mxu1 %vm62_vm0, %v1369_v38 }
  0x40   :  { %889 = vmatprep.subr.mxu0 %v1048_v3  ;;  %896 = vmatprep.subr.mxu1 %v1048_v3 }
  0x43   :  { %890 = vmatpush3.xpose.msk.msra.mxu0 %vm62_vm0, %v1353_v36 }
  0x44   :  { %891 = vmatprep.subr.mxu0 %v1048_v3 }
  0x47   :  { %892 = vmatpush3.xpose.msk.msra.mxu0 %vm62_vm0, %v1361_v37 }
  0x48   :  { %931 = vmatprep.subr.mxu0 %v1048_v3 }
  0xca   :  { %v825_v39 = vpop.f32.mrf.mxu0 }
  0xcb   :  { %894 = vmatmul.mubr.msk.f32.vlgmr.msra.gmra.mxu0 %vm62_vm0, %v825_v39 }
  0xcc   :  { %v135_v40 = vpop.f32.mrf.mxu0  ;;  %932 = vmatpush3.msra.mxu0 %v1131_v9  ;;  %963 = vmatprep.mubr.msk.f32.mxu0 %vm1049_vm1, %v1048_v3 }
  0xcd   :  { %859 = vmatmul.mubr.msk.f32.vlgmr.msra.gmra.mxu1 %vm62_vm0, %v135_v40  ;;  %933 = vmatprep.subr.mxu0 %v1048_v3 }
  0xce   :  { %897 = vmatpush3.msra.mxu1 %v1110_v5  ;;  %934 = vmatpush3.msra.mxu0 %v1150_v11  ;;  %v560_v5 = vld [vmem:[%s1486_s3 + $0x8] sm:$0xff] }
  0xcf   :  { %898 = vmatprep.subr.mxu1 %v1048_v3  ;;  %935 = vmatprep.subr.mxu0 %v1048_v3 }
  0xd0   :  { %899 = vmatpush3.msra.mxu1 %v1121_v7  ;;  %936 = vmatpush3.msra.mxu0 %v1166_v13 }
  0xd1   :  { %900 = vmatprep.subr.mxu1 %v1048_v3  ;;  %937 = vmatprep.subr.mxu0 %v1048_v3 }
  0xd2   :  { %901 = vmatpush3.msra.mxu1 %v1139_v10  ;;  %938 = vmatpush3.msra.mxu0 %v1182_v15 }
  0xd3   :  { %902 = vmatprep.subr.mxu1 %v1048_v3  ;;  %939 = vmatprep.subr.mxu0 %v1048_v3 }
  0xd4   :  { %903 = vmatpush3.msra.mxu1 %v1158_v12  ;;  %940 = vmatpush3.msra.mxu0 %v1198_v17 }
  0xd5   :  { %904 = vmatprep.subr.mxu1 %v1048_v3  ;;  %941 = vmatprep.subr.mxu0 %v1048_v3 }
  0xd6   :  { %905 = vmatpush3.msra.mxu1 %v1174_v14  ;;  %942 = vmatpush3.msra.mxu0 %v1214_v19 }
  0xd7   :  { %906 = vmatprep.subr.mxu1 %v1048_v3  ;;  %943 = vmatprep.subr.mxu0 %v1048_v3 }
  0xd8   :  { %907 = vmatpush3.msra.mxu1 %v1190_v16  ;;  %944 = vmatpush3.msra.mxu0 %v1230_v21 }
  0xd9   :  { %908 = vmatprep.subr.mxu1 %v1048_v3  ;;  %945 = vmatprep.subr.mxu0 %v1048_v3 }
  0xda   :  { %909 = vmatpush3.msra.mxu1 %v1206_v18  ;;  %946 = vmatpush3.msra.mxu0 %v1246_v23 }
  0xdb   :  { %910 = vmatprep.subr.mxu1 %v1048_v3  ;;  %947 = vmatprep.subr.mxu0 %v1048_v3 }
  0xdc   :  { %911 = vmatpush3.msra.mxu1 %v1222_v20  ;;  %948 = vmatpush3.msra.mxu0 %v1262_v25 }
  0xdd   :  { %912 = vmatprep.subr.mxu1 %v1048_v3  ;;  %949 = vmatprep.subr.mxu0 %v1048_v3 }
  0xde   :  { %913 = vmatpush3.msra.mxu1 %v1238_v22  ;;  %950 = vmatpush3.msra.mxu0 %v1278_v27 }
  0xdf   :  { %914 = vmatprep.subr.mxu1 %v1048_v3  ;;  %951 = vmatprep.subr.mxu0 %v1048_v3 }
  0xe0   :  { %915 = vmatpush3.msra.mxu1 %v1254_v24  ;;  %952 = vmatpush3.msra.mxu0 %v1294_v29 }
  0xe1   :  { %916 = vmatprep.subr.mxu1 %v1048_v3  ;;  %953 = vmatprep.subr.mxu0 %v1048_v3 }
  0xe2   :  { %917 = vmatpush3.msra.mxu1 %v1270_v26  ;;  %954 = vmatpush3.msra.mxu0 %v1310_v31 }
  0xe3   :  { %918 = vmatprep.subr.mxu1 %v1048_v3  ;;  %955 = vmatprep.subr.mxu0 %v1048_v3 }
  0xe4   :  { %919 = vmatpush3.msra.mxu1 %v1286_v28  ;;  %956 = vmatpush3.msra.mxu0 %v1326_v33 }
  0xe5   :  { %920 = vmatprep.subr.mxu1 %v1048_v3  ;;  %957 = vmatprep.subr.mxu0 %v1048_v3 }
  0xe6   :  { %921 = vmatpush3.msra.mxu1 %v1302_v30  ;;  %928 = vmatprep.mubr.msk.f32.mxu1 %vm1049_vm1, %v1048_v3 }
  0xe7   :  { %922 = vmatprep.subr.mxu1 %v1048_v3  ;;  %958 = vmatpush3.msra.mxu0 %v1342_v35 }
  0xe8   :  { %923 = vmatpush3.msra.mxu1 %v1318_v32  ;;  %959 = vmatprep.subr.mxu0 %v1048_v3 }
  0xe9   :  { %924 = vmatprep.subr.mxu1 %v1048_v3  ;;  %960 = vmatpush3.msra.mxu0 %v1353_v36 }
  0xea   :  { %925 = vmatpush3.msra.mxu1 %v1334_v34  ;;  %961 = vmatprep.subr.mxu0 %v1048_v3 }
  0xeb   :  { %926 = vmatprep.subr.mxu1 %v1048_v3  ;;  %962 = vmatpush3.msra.mxu0 %v1361_v37  ;;  %v562_v3 = vld [vmem:[%s1486_s3 + $0x18] sm:$0xff] }
  0xec   :  { %927 = vmatpush3.msra.mxu1 %v1369_v38 }
  0xed   :  { %966 = vmatprep.subr.mxu1 %v566_v57 }
 0x18b   :  { %v382_v43 = vpop.f32.mrf.mxu0 }
 0x18c   :  { %v390_v48 = vsel %vm388_vm2, %v382_v43, -1e+30 }
 0x18d   :  { %v261_v44 = vpop.f32.mrf.mxu1  ;;  %v895_v45 = vpop.f32.mrf.mxu0 }
 0x18e   :  { %v389_v46 = vsel %vm388_vm2, %v261_v44, -1e+30 }
 0x18f   :  { %391 = vmax.xlane.f32.xlu0 %v389_v46  ;;  %v860_v47 = vpop.f32.mrf.mxu1 }
 0x193   :  { %393 = vmax.xlane.f32.xlu0 %v390_v48 }
 0x1a9   :  { %551 = vrot.lane.b32.xlu0 %v1099_v2, %s1050_s20  ;;  %v563_v2 = vld [vmem:[%s1486_s3 + $0x20] sm:$0xff] }
 0x218   :  { %v392_v49 = vpop.xlane.xlu0 %391 }
 0x219   :  { %v395_v50 = vsub.f32 %v389_v46, %v392_v49 }
 0x21b   :  { %v397_v51 = vmul.f32 1.442695, %v395_v50 }
 0x21c   :  { %v394_v52 = vpop.xlane.xlu0 %393 }
 0x21d   :  { %992 = vpow2.f32 %v397_v51  ;;  %v396_v53 = vsub.f32 %v390_v48, %v394_v52 }
 0x21f   :  { %v399_v54 = vmul.f32 1.442695, %v396_v53 }
 0x220   :  { %v552_v7 = vpop.permute.xlu0 %551 }
 0x221   :  { %994 = vpow2.f32 %v399_v54 }
 0x22a   :  { %v993_v55 = vpop.eup %992 }
 0x22b   :  { %401 = vadd.xlane.f32.xlu1 %v993_v55 }
 0x22e   :  { %v995_v56 = vpop.eup %994 }
 0x22f   :  { %403 = vadd.xlane.f32.xlu1 %v995_v56 }
 0x240   :  { %553 = vrot.lane.b32.xlu1 %v1126_v8, %s1050_s20 }
 0x2b4   :  { %v402_v58 = vpop.xlane.xlu1 %401 }
 0x2b5   :  { %996 = vrcp.f32 %v402_v58 }
 0x2b8   :  { %v404_v59 = vpop.xlane.xlu1 %403 }
 0x2b9   :  { %998 = vrcp.f32 %v404_v59 }
 0x2bc   :  { %v554_v11 = vpop.permute.xlu1 %553 }
 0x2c2   :  { %v997_v60 = vpop.eup %996 }
 0x2c3   :  { %v407_v61 = vmul.f32 %v997_v60, %v993_v55 }
 0x2c5   :  { %929 = vmatmul.mubr.f32.vlgmr.msra.gmra.mxu1 %v407_v61  ;;  %409 = vst [vmem:[#allocation4] sm:$0xff] %v407_v61 }
 0x2c6   :  { %v999_v63 = vpop.eup %998  ;;  %967 = vmatpush3.msra.mxu1 %v566_v57 }
 0x2c7   :  { %v408_v1 = vmul.f32 %v999_v63, %v995_v56  ;;  %968 = vmatprep.subr.mxu1 %v565_v62 }
 0x2c8   :  { %969 = vmatpush3.msra.mxu1 %v565_v62 }
 0x2c9   :  { %964 = vmatmul.mubr.f32.vlgmr.msra.gmra.mxu0 %v408_v1  ;;  %410 = vst [vmem:[#allocation4 + $0x8] sm:$0xff] %v408_v1  ;;  %970 = vmatprep.subr.mxu1 %v564_v0 }
 0x2ca   :  { %971 = vmatpush3.msra.mxu1 %v564_v0 }
 0x2cb   :  { %972 = vmatprep.subr.mxu1 %v563_v2 }
 0x2cc   :  { %973 = vmatpush3.msra.mxu1 %v563_v2 }
 0x2cd   :  { %974 = vmatprep.subr.mxu1 %v562_v3 }
 0x2ce   :  { %975 = vmatpush3.msra.mxu1 %v562_v3 }
 0x2cf   :  { %976 = vmatprep.subr.mxu1 %v561_v4 }
 0x2d0   :  { %977 = vmatpush3.msra.mxu1 %v561_v4 }
 0x2d1   :  { %978 = vmatprep.subr.mxu1 %v560_v5 }
 0x2d2   :  { %979 = vmatpush3.msra.mxu1 %v560_v5 }
 0x2d3   :  { %980 = vmatprep.subr.mxu1 %v559_v6 }
 0x2d4   :  { %981 = vmatpush3.msra.mxu1 %v559_v6 }
 0x385   :  { %v477_v8 = vpop.f32.mrf.mxu1 }
 0x386   :  { %v557_v9 = vsel %vm62_vm0, %v477_v8, %v552_v7 }
 0x387   :  { %v930_v10 = vpop.f32.mrf.mxu1  ;;  %982 = vmatprep.mubr.msk.f32.mxu1 %vm574_vm3, %v557_v9 }
 0x389   :  { %v547_v12 = vpop.f32.mrf.mxu0 }
 0x38a   :  { %v558_v13 = vsel %vm62_vm0, %v547_v12, %v554_v11 }
 0x38b   :  { %v965_v14 = vpop.f32.mrf.mxu0  ;;  %983 = vmatmul.mubr.msk.f32.vlgmr.msra.gmra.mxu1 %vm574_vm3, %v558_v13 }
 0x38c   :  { %1015 = shalt.err (!%p1012_p4)
}
 0x38d   :  { %s1052_s3 = smov 128   ;;  %s1053_s14 = smov 8   ;;  %v728_v15 = vld [vmem:[%s1487_s4] ss:$0 sm:$0xff] }
 0x38e   :  { %683 = dma.vmem_to_hbm [thread:$0]  %s678_s12, 256, %s1489_s6, [#allocation5], %s1052_s3, %s1052_s3, %s1053_s14  }
 0x38f   :  { %s1054_s17 = smov [#allocation2]  }
 0x390   :  { %s665_s18 = sshll.u32 %s1054_s17, 4  ;;  %s666_s18 = int_to_ptr.vmem [resolvable:$true] %s665_s18 }
 0x391   :  { %s1024_s1 = scalar_lea.vmem %s666_s18, 256  ;;  %p1029_p6 = scmp.lt.s32.totalorder %s666_s18, %s666_s18 }
 0x392   :  { %p1025_p5 = scmp.ne.s32.totalorder %s666_s18, %s1024_s1  ;;  %p1030_p7 = scmp.lt.s32.totalorder %s1024_s1, %s1024_s1 }
 0x394   :  { %p1031_p8 = por %p1030_p7, %p1029_p6 }
 0x396   :  { %p1032_p9 = pnand %p1031_p8, %p1025_p5 }
 0x44b   :  { %v984_v16 = vpop.f32.mrf.mxu1 }
 0x44c   :  { %v653_v17 = vadd.f32 %v984_v16, %v728_v15 }
 0x44d   :  { %v647_v18 = vpop.f32.mrf.mxu1 }
 0x44e   :  { %1000 = vtanh.f32 %v653_v17  ;;  %v648_v19 = vadd.f32 %v728_v15, %v647_v18 }
 0x450   :  { %1002 = vtanh.f32 %v648_v19 }
 0x45b   :  { %v1001_v20 = vpop.eup %1000 }
 0x45c   :  { %659 = vst [vmem:[#allocation2 + $0x8] sm:$0xff] %v1001_v20 }
 0x45d   :  { %v1003_v21 = vpop.eup %1002 }
 0x45e   :  { %658 = vst [vmem:[#allocation2] sm:$0xff] %v1003_v21 }
 0x45f   :  { %1035 = shalt.err (!%p1032_p9)
}
 0x460   :  { %671 = dma.vmem_to_hbm [thread:$0]  %s666_s18, 256, %s1488_s5, [#allocation3], %s1052_s3, %s1052_s3, %s1053_s14  }
 0x461   :  { %1044 = dma.done.wait [#allocation3], 256  }
 0x462   :  { %1045 = vsyncadd [#allocation3], 4294967040 }
 0x463   :  { %1046 = dma.done.wait [#allocation5], 256  }
 0x464   :  { %1047 = vsyncadd [#allocation5], 4294967040 }
 0x465   :  { %690 = vsyncpa [#allocation3], 1 }
 0x466   :  { %691 = vsyncpa [#allocation5], 1 }

</bundles_post_ra>
